<compile_context>
chip_gen: v6e
topology: v6e:2x2x1
jax: 0.10.0
libtpu: 0.0.40
codegen_flags: <defaults>
</compile_context>

<pallas_src>
import functools

import numpy as np

import jax
import jax.numpy as jnp
from jax.experimental import pallas as pl
from jax.experimental.pallas import tpu as pltpu


# ----------------------------- plain-JAX glue ------------------------------ #

def adaptive_avg_pool2d(x, K):
    """PyTorch AdaptiveAvgPool2d((K, K)): bin i = [floor(i*H/K), ceil((i+1)*H/K))."""
    B, C, H, W = x.shape
    rows = []
    for i in range(K):
        h0 = (i * H) // K
        h1 = -((-(i + 1) * H) // K)  # ceil
        cols = []
        for j in range(K):
            w0 = (j * W) // K
            w1 = -((-(j + 1) * W) // K)
            cols.append(jnp.mean(x[:, :, h0:h1, w0:w1], axis=(2, 3)))
        rows.append(jnp.stack(cols, axis=-1))
    return jnp.stack(rows, axis=-2)  # (B, C, K, K)


def _proj_block(x, w1, bn_g, bn_b, bn_m, bn_v, w2, b2):
    """ConvModule(1x1 conv no-bias -> BN2d -> GELU) followed by 1x1 Conv2d with bias."""
    y = jnp.einsum('oc,bchw->bohw', w1, x)
    y = (bn_g[None, :, None, None] * (y - bn_m[None, :, None, None])
         / jnp.sqrt(bn_v[None, :, None, None] + 1e-5) + bn_b[None, :, None, None])
    y = jax.nn.gelu(y, approximate=False)          # nn.GELU() -> exact erf form
    y = jnp.einsum('oc,bchw->bohw', w2, y) + b2[None, :, None, None]
    return y


def _xla_dwconv(x, weight, bias, K):
    """Grouped-conv reference / VMEM-overflow fallback path (pure XLA)."""
    B, C, H, W = x.shape
    BC = B * C
    y = jax.lax.conv_general_dilated(
        x.reshape(1, BC, H, W), weight.reshape(BC, 1, K, K),
        window_strides=(1, 1), padding=[(K // 2, K // 2)] * 2,
        dimension_numbers=('NCHW', 'OIHW', 'NCHW'), feature_group_count=BC)
    return (y + bias.reshape(1, BC, 1, 1)).reshape(B, C, H, W)


# --------------------------- Pallas depthwise conv ------------------------- #

@functools.lru_cache(maxsize=None)
def _roll_mode():
    """One-time probe of pltpu.roll's rotation convention.

    Returns 'pltpu_numpy' if pltpu.roll matches np.roll (result[i] = x[(i-shift)%n]),
    'pltpu_reversed' if it rotates the other way, or 'jnp' to fall back to
    jnp.roll (whose semantics are guaranteed) if the probe can't be trusted.
    """
    n = 256

    def probe(x_ref, o_ref):
        o_ref[...] = pltpu.roll(x_ref[...], 1, axis=1)

    try:
        x = jnp.broadcast_to(jnp.arange(n, dtype=jnp.float32)[None, :], (8, n))
        y = pl.pallas_call(probe, out_shape=jax.ShapeDtypeStruct((8, n), jnp.float32))(x)
        v = int(jax.device_get(y)[0, 0])
    except Exception:
        return "jnp"
    if v == n - 1:
        return "pltpu_numpy"
    if v == 1:
        return "pltpu_reversed"
    return "jnp"


def _border_masks(H, W, K):
    """(K*K, H*W) {0,1} masks: mask[j, p] == 1 iff tap j's source pixel of output
    pixel p lies inside the image (implicit zero padding otherwise)."""
    pad = K // 2
    m = np.ones((K * K, H, W), np.float32)
    for kh in range(K):
        for kw in range(K):
            j, dh, dw = kh * K + kw, kh - pad, kw - pad
            if dh < 0:
                m[j, :-dh, :] = 0.0
            if dh > 0:
                m[j, H - dh:, :] = 0.0
            if dw < 0:
                m[j, :, :-dw] = 0.0
            if dw > 0:
                m[j, :, W - dw:] = 0.0
    return jnp.asarray(m.reshape(K * K, H * W))


def _vmem_capacity_bytes():
    """Per-TensorCore VMEM capacity; conservative 64 MiB (v7x) if unknown."""
    try:
        cap = getattr(pltpu.get_tpu_info(), "vmem_capacity_bytes", None)
        if cap:
            return int(cap)
    except Exception:
        pass
    return 64 * 1024 * 1024


def _pick_channel_block(BCp, HW, KK, io_itemsize, budget):
    """Largest channel-row block (multiple of 8, divides BCp) whose double-buffered
    in/out blocks + in-kernel f32 temporaries fit `budget`; prefer a choice that
    leaves >= 2 grid steps (v7x dual TensorCore + DMA/compute overlap)."""
    def bytes_needed(cb):
        return (2 * cb * HW * io_itemsize        # x block, double-buffered
                + 2 * cb * HW * io_itemsize      # out block, double-buffered
                + 2 * (cb * KK + cb) * 4         # weight + bias blocks
                + 2 * KK * HW * 4                # border masks (resident)
                + 6 * cb * HW * 4)               # xv/acc/shifted/term f32 live values

    cands = [cb for cb in range(8, min(BCp, 4096) + 1, 8)
             if BCp % cb == 0 and bytes_needed(cb) <= budget]
    if not cands:
        return None
    multi = [cb for cb in cands if BCp // cb >= 2]
    return max(multi) if multi else max(cands)


def _make_dwconv_kernel(H, W, K, HW, roll_mode):
    pad = K // 2

    def lane_shift(xv, off):
        # shifted[p] = xv[p + off] (wrap-around values are masked out by the caller)
        if roll_mode == "pltpu_numpy":
            return pltpu.roll(xv, (-off) % HW, axis=1)
        if roll_mode == "pltpu_reversed":
            return pltpu.roll(xv, off % HW, axis=1)
        return jnp.roll(xv, -off, axis=1)

    def kernel(x_ref, w_ref, b_ref, m_ref, o_ref):
        # x_ref: (CB, HW)  w_ref: (CB, K*K)  b_ref: (CB, 1)  m_ref: (K*K, HW)
        xv = x_ref[...].astype(jnp.float32)                       # (CB, HW)
        bias = b_ref[...].astype(jnp.float32)                     # (CB, 1)

        def tap_w(kh, kw):
            j = kh * K + kw
            return w_ref[:, j:j + 1].astype(jnp.float32)          # (CB, 1) per-channel tap

        # Center tap (no shift, no border mask) + bias seed the accumulator:
        # saves the zero-init + separate bias pass.
        acc = xv * tap_w(pad, pad) + bias

        for kh in range(K):                                       # fully unrolled taps
            for kw in range(K):
                if kh == pad and kw == pad:
                    continue
                j = kh * K + kw
                off = (kh - pad) * W + (kw - pad)                 # lane offset of source pixel
                shifted = lane_shift(xv, off)                     # XLU lane rotation
                m = m_ref[j:j + 1, :]                             # (1, HW) {0,1} border mask
                acc = acc + (shifted * m) * tap_w(kh, kw)         # VPU FMAs

        o_ref[...] = acc.astype(o_ref.dtype)                      # lane-dense unmasked store

    return kernel


def pallas_dynamic_dwconv(x, weight, bias, K):
    """F.conv2d(x.reshape(1, B*C, H, W), weight (B*C,1,K,K), padding=K//2,
    groups=B*C, bias (B*C,)) on a flattened (B*C, H*W) Pallas layout."""
    assert K % 2 == 1, "odd kernel size expected"
    B, C, H, W = x.shape
    BC, HW, KK = B * C, H * W, K * K

    # Free reshapes: no transposes, no halo-pad pass around the kernel.
    x2 = x.reshape(BC, HW)
    w2 = weight.reshape(BC, KK).astype(jnp.float32)
    b2 = bias.reshape(BC, 1).astype(jnp.float32)

    # Pad the channel (sublane) axis to a multiple of 8.  Padded rows carry
    # zero x/weight/bias -> compute exact zeros and are sliced off below.
    BCp = -(-BC // 8) * 8
    if BCp != BC:
        x2 = jnp.pad(x2, ((0, BCp - BC), (0, 0)))
        w2 = jnp.pad(w2, ((0, BCp - BC), (0, 0)))
        b2 = jnp.pad(b2, ((0, BCp - BC), (0, 0)))

    cap = _vmem_capacity_bytes()
    budget = min(int(cap * 0.40), 40 * 1024 * 1024)   # ~26 MiB on v7x, 40 MiB on v5e/v6e
    vmem_limit = int(min(cap * 0.75, 2 * budget))

    CB = _pick_channel_block(BCp, HW, KK, x2.dtype.itemsize, budget)
    if CB is None:
        # TODO(synk): very large H*W needs a second (spatial) grid axis with a
        # W-lane halo; fall back to the XLA grouped conv instead of blowing VMEM.
        return _xla_dwconv(x, weight, bias, K)

    kernel = _make_dwconv_kernel(H, W, K, HW, _roll_mode())
    masks = _border_masks(H, W, K)

    # TODO(synk): when B*C is tiny (single grid step) a second parallel axis over
    # spatial blocks (with halo) would feed both v7x TensorCores; not implemented.
    out = pl.pallas_call(
        kernel,
        out_shape=jax.ShapeDtypeStruct((BCp, HW), x.dtype),
        grid=(BCp // CB,),
        in_specs=[
            pl.BlockSpec((CB, HW), lambda i: (i, 0)),    # x rows (channels on sublanes)
            pl.BlockSpec((CB, KK), lambda i: (i, 0)),    # per-channel taps
            pl.BlockSpec((CB, 1), lambda i: (i, 0)),     # per-channel bias
            pl.BlockSpec((KK, HW), lambda i: (0, 0)),    # border masks (constant block)
        ],
        out_specs=pl.BlockSpec((CB, HW), lambda i: (i, 0)),
        compiler_params=pltpu.CompilerParams(
            dimension_semantics=("parallel",),           # channel blocks are independent
            vmem_limit_bytes=vmem_limit),
    )(x2, w2, b2, masks)

    if BCp != BC:
        out = out[:BC]
    return out.reshape(B, C, H, W)


# ------------------------------ full forward ------------------------------- #

def ddc_forward(x, p, K=3, G=2, use_pallas=True):
    B, C, H, W = x.shape

    # --- dynamic kernel generation ---
    x1 = adaptive_avg_pool2d(x, K)                                  # (B, C, K, K)
    scale1 = _proj_block(x1, **p['proj'])                           # (B, C, K, K)
    scale3 = jnp.concatenate([scale1, x1.astype(scale1.dtype)], axis=1)   # (B, 2C, K, K)
    scale = jax.nn.softmax(scale3.reshape(B, G, C, K, K), axis=1)   # softmax over groups
    weight = jnp.sum(scale * p['weight'][None], axis=1)             # (B, C, K, K)

    # --- dynamic bias generation ---
    xm = jnp.mean(x, axis=(2, 3), keepdims=True)                    # (B, C, 1, 1)
    s = _proj_block(xm, **p['proj1'])                               # (B, 2C, 1, 1)
    s = jax.nn.softmax(s.reshape(B, G, C), axis=1)
    bias = jnp.sum(s * p['bias'][None], axis=1)                     # (B, C)

    # --- depthwise dynamic conv (hot path) ---
    if use_pallas:
        return pallas_dynamic_dwconv(x, weight, bias, K)
    return _xla_dwconv(x, weight, bias, K)


# ------------------------------ parameter init ----------------------------- #

def init_params(key, dim, K=3, G=2, rr=2):
    cm = dim // rr
    ks = jax.random.split(key, 8)

    def tn(k, shape, std=0.02):
        return std * jax.random.truncated_normal(k, -2.0, 2.0, shape, jnp.float32)

    return {
        'weight': tn(ks[0], (G, dim, K, K)),          # nn.Parameter, trunc_normal(0.02)
        'bias':   tn(ks[1], (G, dim)),                # nn.Parameter, trunc_normal(0.02)
        'proj': {
            'w1': tn(ks[2], (cm, dim), 0.1),
            'bn_g': jnp.ones((cm,), jnp.float32), 'bn_b': jnp.zeros((cm,), jnp.float32),
            'bn_m': jnp.zeros((cm,), jnp.float32), 'bn_v': jnp.ones((cm,), jnp.float32),
            'w2': tn(ks[3], (dim, cm), 0.1),
            'b2': tn(ks[4], (dim,), 0.1),
        },
        'proj1': {
            'w1': tn(ks[5], (cm, dim), 0.1),
            'bn_g': jnp.ones((cm,), jnp.float32), 'bn_b': jnp.zeros((cm,), jnp.float32),
            'bn_m': jnp.zeros((cm,), jnp.float32), 'bn_v': jnp.ones((cm,), jnp.float32),
            'w2': tn(ks[6], (dim * G, cm), 0.1),
            'b2': tn(ks[7], (dim * G,), 0.1),
        },
    }


# ----------------------------------- main ----------------------------------- #

if __name__ == "__main__":
    B, C, H, W = 2, 4, 16, 16
    K, G = 3, 2

    key = jax.random.PRNGKey(0)
    kx, kp = jax.random.split(key)
    x = jax.random.normal(kx, (B, C, H, W), jnp.float32)
    params = init_params(kp, C, K=K, G=G, rr=2)

    out = jax.block_until_ready(ddc_forward(x, params, K=K, G=G, use_pallas=True))
    ref = jax.block_until_ready(ddc_forward(x, params, K=K, G=G, use_pallas=False))

    assert out.shape == (B, C, H, W)
    max_err = float(jnp.max(jnp.abs(out - ref)))
    assert max_err < 1e-4, f"f32 mismatch vs reference: {max_err}"

    # bf16 HBM-transfer path (in-kernel accumulation stays f32).
    out_bf16 = jax.block_until_ready(
        ddc_forward(x.astype(jnp.bfloat16), params, K=K, G=G, use_pallas=True))
    assert out_bf16.dtype == jnp.bfloat16
    max_err_bf16 = float(jnp.max(jnp.abs(out_bf16.astype(jnp.float32) - ref)))
    assert max_err_bf16 < 3e-2, f"bf16 mismatch vs reference: {max_err_bf16}"

    print("KERNEL_OK")
</pallas_src>

<mosaic_0001>
module attributes {stable_mosaic.version = 11 : i64} {
  func.func @probe(%arg0: memref<8x256xf32, #tpu.memory_space<vmem>>, %arg1: memref<8x256xf32, #tpu.memory_space<vmem>>) attributes {dimension_semantics = [], scalar_prefetch = 0 : i64, scratch_operands = 0 : i64, tpu.core_type = #tpu.core_type<tc>} {
    %c0 = arith.constant 0 : index
    %c0_0 = arith.constant 0 : index
    %0 = vector.load %arg0[%c0, %c0_0] : memref<8x256xf32, #tpu.memory_space<vmem>>, vector<8x256xf32>
    %c1_i32 = arith.constant 1 : i32
    %1 = tpu.dynamic_rotate %0 by %c1_i32 dim 1 : vector<8x256xf32>, i32 -> vector<8x256xf32>
    %c0_1 = arith.constant 0 : index
    %c0_2 = arith.constant 0 : index
    %2 = vector.load %arg1[%c0_1, %c0_2] : memref<8x256xf32, #tpu.memory_space<vmem>>, vector<8x256xf32>
    tpu.vector_store %arg1[%c0_1, %c0_2], %1 {strides = array<i32>} : memref<8x256xf32, #tpu.memory_space<vmem>>, vector<8x256xf32>,
    return
  }
}

module attributes {stable_mosaic.version = 11 : i64} {
  func.func @kernel(%arg0: i32, %arg1: memref<8x256xf32, #tpu.memory_space<vmem>>, %arg2: memref<8x9xf32, #tpu.memory_space<vmem>>, %arg3: memref<8x1xf32, #tpu.memory_space<vmem>>, %arg4: memref<9x256xf32, #tpu.memory_space<vmem>>, %arg5: memref<8x256xf32, #tpu.memory_space<vmem>>) attributes {dimension_semantics = [#tpu.dimension_semantics<parallel>], iteration_bounds = array<i64: 1>, scalar_prefetch = 0 : i64, scratch_operands = 0 : i64, tpu.core_type = #tpu.core_type<tc>, window_params = [{transform_indices = @transform_0, window_bounds = array<i64: 8, 256>}, {transform_indices = @transform_1, window_bounds = array<i64: 8, 9>}, {transform_indices = @transform_2, window_bounds = array<i64: 8, 1>}, {pipeline_mode = #tpu.pipeline_mode<synchronous>, transform_indices = @transform_3, window_bounds = array<i64: 9, 256>}, {transform_indices = @transform_4, window_bounds = array<i64: 8, 256>}]} {
    %c0 = arith.constant 0 : index
    %c0_0 = arith.constant 0 : index
    %0 = vector.load %arg1[%c0, %c0_0] : memref<8x256xf32, #tpu.memory_space<vmem>>, vector<8x256xf32>
    %c0_1 = arith.constant 0 : index
    %c0_2 = arith.constant 0 : index
    %1 = vector.load %arg3[%c0_1, %c0_2] : memref<8x1xf32, #tpu.memory_space<vmem>>, vector<8x1xf32>
    %c0_3 = arith.constant 0 : index
    %c4 = arith.constant 4 : index
    %2 = vector.load %arg2[%c0_3, %c4] : memref<8x9xf32, #tpu.memory_space<vmem>>, vector<8x1xf32>
    %3 = vector.broadcast %2 : vector<8x1xf32> to vector<8x256xf32>
    %4 = arith.mulf %0, %3 : vector<8x256xf32>
    %5 = vector.broadcast %1 : vector<8x1xf32> to vector<8x256xf32>
    %6 = arith.addf %4, %5 : vector<8x256xf32>
    %7 = vector.extract_strided_slice %0 {offsets = [0, 239], sizes = [8, 17], strides = [1, 1]} : vector<8x256xf32> to vector<8x17xf32>
    %8 = vector.extract_strided_slice %0 {offsets = [0, 0], sizes = [8, 239], strides = [1, 1]} : vector<8x256xf32> to vector<8x239xf32>
    %9 = tpu.concatenate %7, %8 in 1 : vector<8x17xf32>, vector<8x239xf32> -> vector<8x256xf32>
    %c0_4 = arith.constant 0 : index
    %c0_5 = arith.constant 0 : index
    %10 = vector.load %arg4[%c0_4, %c0_5] : memref<9x256xf32, #tpu.memory_space<vmem>>, vector<1x256xf32>
    %11 = vector.broadcast %10 : vector<1x256xf32> to vector<8x256xf32>
    %12 = arith.mulf %9, %11 : vector<8x256xf32>
    %c0_6 = arith.constant 0 : index
    %c0_7 = arith.constant 0 : index
    %13 = vector.load %arg2[%c0_6, %c0_7] : memref<8x9xf32, #tpu.memory_space<vmem>>, vector<8x1xf32>
    %14 = vector.broadcast %13 : vector<8x1xf32> to vector<8x256xf32>
    %15 = arith.mulf %12, %14 : vector<8x256xf32>
    %16 = arith.addf %6, %15 : vector<8x256xf32>
    %17 = vector.extract_strided_slice %0 {offsets = [0, 240], sizes = [8, 16], strides = [1, 1]} : vector<8x256xf32> to vector<8x16xf32>
    %18 = vector.extract_strided_slice %0 {offsets = [0, 0], sizes = [8, 240], strides = [1, 1]} : vector<8x256xf32> to vector<8x240xf32>
    %19 = tpu.concatenate %17, %18 in 1 : vector<8x16xf32>, vector<8x240xf32> -> vector<8x256xf32>
    %c1 = arith.constant 1 : index
    %c0_8 = arith.constant 0 : index
    %20 = vector.load %arg4[%c1, %c0_8] : memref<9x256xf32, #tpu.memory_space<vmem>>, vector<1x256xf32>
    %21 = vector.broadcast %20 : vector<1x256xf32> to vector<8x256xf32>
    %22 = arith.mulf %19, %21 : vector<8x256xf32>
    %c0_9 = arith.constant 0 : index
    %c1_10 = arith.constant 1 : index
    %23 = vector.load %arg2[%c0_9, %c1_10] : memref<8x9xf32, #tpu.memory_space<vmem>>, vector<8x1xf32>
    %24 = vector.broadcast %23 : vector<8x1xf32> to vector<8x256xf32>
    %25 = arith.mulf %22, %24 : vector<8x256xf32>
    %26 = arith.addf %16, %25 : vector<8x256xf32>
    %27 = vector.extract_strided_slice %0 {offsets = [0, 241], sizes = [8, 15], strides = [1, 1]} : vector<8x256xf32> to vector<8x15xf32>
    %28 = vector.extract_strided_slice %0 {offsets = [0, 0], sizes = [8, 241], strides = [1, 1]} : vector<8x256xf32> to vector<8x241xf32>
    %29 = tpu.concatenate %27, %28 in 1 : vector<8x15xf32>, vector<8x241xf32> -> vector<8x256xf32>
    %c2 = arith.constant 2 : index
    %c0_11 = arith.constant 0 : index
    %30 = vector.load %arg4[%c2, %c0_11] : memref<9x256xf32, #tpu.memory_space<vmem>>, vector<1x256xf32>
    %31 = vector.broadcast %30 : vector<1x256xf32> to vector<8x256xf32>
    %32 = arith.mulf %29, %31 : vector<8x256xf32>
    %c0_12 = arith.constant 0 : index
    %c2_13 = arith.constant 2 : index
    %33 = vector.load %arg2[%c0_12, %c2_13] : memref<8x9xf32, #tpu.memory_space<vmem>>, vector<8x1xf32>
    %34 = vector.broadcast %33 : vector<8x1xf32> to vector<8x256xf32>
    %35 = arith.mulf %32, %34 : vector<8x256xf32>
    %36 = arith.addf %26, %35 : vector<8x256xf32>
    %37 = vector.extract_strided_slice %0 {offsets = [0, 255], sizes = [8, 1], strides = [1, 1]} : vector<8x256xf32> to vector<8x1xf32>
    %38 = vector.extract_strided_slice %0 {offsets = [0, 0], sizes = [8, 255], strides = [1, 1]} : vector<8x256xf32> to vector<8x255xf32>
    %39 = tpu.concatenate %37, %38 in 1 : vector<8x1xf32>, vector<8x255xf32> -> vector<8x256xf32>
    %c3 = arith.constant 3 : index
    %c0_14 = arith.constant 0 : index
    %40 = vector.load %arg4[%c3, %c0_14] : memref<9x256xf32, #tpu.memory_space<vmem>>, vector<1x256xf32>
    %41 = vector.broadcast %40 : vector<1x256xf32> to vector<8x256xf32>
    %42 = arith.mulf %39, %41 : vector<8x256xf32>
    %c0_15 = arith.constant 0 : index
    %c3_16 = arith.constant 3 : index
    %43 = vector.load %arg2[%c0_15, %c3_16] : memref<8x9xf32, #tpu.memory_space<vmem>>, vector<8x1xf32>
    %44 = vector.broadcast %43 : vector<8x1xf32> to vector<8x256xf32>
    %45 = arith.mulf %42, %44 : vector<8x256xf32>
    %46 = arith.addf %36, %45 : vector<8x256xf32>
    %47 = vector.extract_strided_slice %0 {offsets = [0, 1], sizes = [8, 255], strides = [1, 1]} : vector<8x256xf32> to vector<8x255xf32>
    %48 = vector.extract_strided_slice %0 {offsets = [0, 0], sizes = [8, 1], strides = [1, 1]} : vector<8x256xf32> to vector<8x1xf32>
    %49 = tpu.concatenate %47, %48 in 1 : vector<8x255xf32>, vector<8x1xf32> -> vector<8x256xf32>
    %c5 = arith.constant 5 : index
    %c0_17 = arith.constant 0 : index
    %50 = vector.load %arg4[%c5, %c0_17] : memref<9x256xf32, #tpu.memory_space<vmem>>, vector<1x256xf32>
    %51 = vector.broadcast %50 : vector<1x256xf32> to vector<8x256xf32>
    %52 = arith.mulf %49, %51 : vector<8x256xf32>
    %c0_18 = arith.constant 0 : index
    %c5_19 = arith.constant 5 : index
    %53 = vector.load %arg2[%c0_18, %c5_19] : memref<8x9xf32, #tpu.memory_space<vmem>>, vector<8x1xf32>
    %54 = vector.broadcast %53 : vector<8x1xf32> to vector<8x256xf32>
    %55 = arith.mulf %52, %54 : vector<8x256xf32>
    %56 = arith.addf %46, %55 : vector<8x256xf32>
    %57 = vector.extract_strided_slice %0 {offsets = [0, 15], sizes = [8, 241], strides = [1, 1]} : vector<8x256xf32> to vector<8x241xf32>
    %58 = vector.extract_strided_slice %0 {offsets = [0, 0], sizes = [8, 15], strides = [1, 1]} : vector<8x256xf32> to vector<8x15xf32>
    %59 = tpu.concatenate %57, %58 in 1 : vector<8x241xf32>, vector<8x15xf32> -> vector<8x256xf32>
    %c6 = arith.constant 6 : index
    %c0_20 = arith.constant 0 : index
    %60 = vector.load %arg4[%c6, %c0_20] : memref<9x256xf32, #tpu.memory_space<vmem>>, vector<1x256xf32>
    %61 = vector.broadcast %60 : vector<1x256xf32> to vector<8x256xf32>
    %62 = arith.mulf %59, %61 : vector<8x256xf32>
    %c0_21 = arith.constant 0 : index
    %c6_22 = arith.constant 6 : index
    %63 = vector.load %arg2[%c0_21, %c6_22] : memref<8x9xf32, #tpu.memory_space<vmem>>, vector<8x1xf32>
    %64 = vector.broadcast %63 : vector<8x1xf32> to vector<8x256xf32>
    %65 = arith.mulf %62, %64 : vector<8x256xf32>
    %66 = arith.addf %56, %65 : vector<8x256xf32>
    %67 = vector.extract_strided_slice %0 {offsets = [0, 16], sizes = [8, 240], strides = [1, 1]} : vector<8x256xf32> to vector<8x240xf32>
    %68 = vector.extract_strided_slice %0 {offsets = [0, 0], sizes = [8, 16], strides = [1, 1]} : vector<8x256xf32> to vector<8x16xf32>
    %69 = tpu.concatenate %67, %68 in 1 : vector<8x240xf32>, vector<8x16xf32> -> vector<8x256xf32>
    %c7 = arith.constant 7 : index
    %c0_23 = arith.constant 0 : index
    %70 = vector.load %arg4[%c7, %c0_23] : memref<9x256xf32, #tpu.memory_space<vmem>>, vector<1x256xf32>
    %71 = vector.broadcast %70 : vector<1x256xf32> to vector<8x256xf32>
    %72 = arith.mulf %69, %71 : vector<8x256xf32>
    %c0_24 = arith.constant 0 : index
    %c7_25 = arith.constant 7 : index
    %73 = vector.load %arg2[%c0_24, %c7_25] : memref<8x9xf32, #tpu.memory_space<vmem>>, vector<8x1xf32>
    %74 = vector.broadcast %73 : vector<8x1xf32> to vector<8x256xf32>
    %75 = arith.mulf %72, %74 : vector<8x256xf32>
    %76 = arith.addf %66, %75 : vector<8x256xf32>
    %77 = vector.extract_strided_slice %0 {offsets = [0, 17], sizes = [8, 239], strides = [1, 1]} : vector<8x256xf32> to vector<8x239xf32>
    %78 = vector.extract_strided_slice %0 {offsets = [0, 0], sizes = [8, 17], strides = [1, 1]} : vector<8x256xf32> to vector<8x17xf32>
    %79 = tpu.concatenate %77, %78 in 1 : vector<8x239xf32>, vector<8x17xf32> -> vector<8x256xf32>
    %c8 = arith.constant 8 : index
    %c0_26 = arith.constant 0 : index
    %80 = vector.load %arg4[%c8, %c0_26] : memref<9x256xf32, #tpu.memory_space<vmem>>, vector<1x256xf32>
    %81 = vector.broadcast %80 : vector<1x256xf32> to vector<8x256xf32>
    %82 = arith.mulf %79, %81 : vector<8x256xf32>
    %c0_27 = arith.constant 0 : index
    %c8_28 = arith.constant 8 : index
    %83 = vector.load %arg2[%c0_27, %c8_28] : memref<8x9xf32, #tpu.memory_space<vmem>>, vector<8x1xf32>
    %84 = vector.broadcast %83 : vector<8x1xf32> to vector<8x256xf32>
    %85 = arith.mulf %82, %84 : vector<8x256xf32>
    %86 = arith.addf %76, %85 : vector<8x256xf32>
    %c0_29 = arith.constant 0 : index
    %c0_30 = arith.constant 0 : index
    %87 = vector.load %arg5[%c0_29, %c0_30] : memref<8x256xf32, #tpu.memory_space<vmem>>, vector<8x256xf32>
    tpu.vector_store %arg5[%c0_29, %c0_30], %86 {strides = array<i32>} : memref<8x256xf32, #tpu.memory_space<vmem>>, vector<8x256xf32>,
    return
  }
  func.func @transform_0(%arg0: i32) -> (i32, i32) {
    %c0_i32 = arith.constant 0 : i32
    %c0_i32_0 = arith.constant 0 : i32
    return %arg0, %c0_i32 : i32, i32
  }
  func.func @transform_1(%arg0: i32) -> (i32, i32) {
    %c0_i32 = arith.constant 0 : i32
    %c0_i32_0 = arith.constant 0 : i32
    return %arg0, %c0_i32 : i32, i32
  }
  func.func @transform_2(%arg0: i32) -> (i32, i32) {
    %c0_i32 = arith.constant 0 : i32
    %c0_i32_0 = arith.constant 0 : i32
    return %arg0, %c0_i32 : i32, i32
  }
  func.func @transform_3(%arg0: i32) -> (i32, i32) {
    %c0_i32 = arith.constant 0 : i32
    %c0_i32_0 = arith.constant 0 : i32
    %c0_i32_1 = arith.constant 0 : i32
    return %c0_i32, %c0_i32_0 : i32, i32
  }
  func.func @transform_4(%arg0: i32) -> (i32, i32) {
    %c0_i32 = arith.constant 0 : i32
    %c0_i32_0 = arith.constant 0 : i32
    return %arg0, %c0_i32 : i32, i32
  }
}

</mosaic_0001>

<bundles_post_ra>
// kernel: tpu_custom_call.1
= control target key start
LH: loop header
LB: loop body
LE: loop exit
PB: predicated region body
PF: predicated region fallthrough
CT: control target
= control target key end

     0   :  { %6 = vsyncpa [#allocation3], 0  ;;  %s115_s0 = inlined_call_operand.hbm [shape: f32[8,256], index: 0, kind: input, shape index: {}]   ;;  %s116_s1 = inlined_call_operand.hbm [shape: f32[8,256], index: 1, kind: output, shape index: {}]  }
   0x1   :  { %7 = vsyncpa [#allocation4], 0  ;;  %s96_s6 = smov [#allocation2]  }
   0x2   :  { %s14_s7 = sshll.u32 %s96_s6, 4  ;;  %s15_s7 = int_to_ptr.vmem [resolvable:$true] %s14_s7 }
   0x3   :  { %s60_s8 = scalar_lea.vmem %s15_s7, 256  ;;  %p65_p1 = scmp.lt.s32.totalorder %s15_s7, %s15_s7 }
   0x4   :  { %p61_p0 = scmp.ne.s32.totalorder %s15_s7, %s60_s8  ;;  %p66_p2 = scmp.lt.s32.totalorder %s60_s8, %s60_s8 }
   0x6   :  { %p67_p3 = por %p66_p2, %p65_p1 }
   0x8   :  { %p68_p4 = pnand %p67_p3, %p61_p0 }
   0xa   :  { %71 = shalt.err (!%p68_p4)
}
   0xb   :  { %17 = dma.hbm_to_vmem [thread:$0]  %s115_s0, 256, %s15_s7, [#allocation3]  }
   0xc   :  { %92 = dma.done.wait [#allocation3], 256  }
   0xd   :  { %93 = vsyncadd [#allocation3], 4294967040  ;;  %v21_v0 = vld [vmem:[#allocation2] sm:$0xff]  ;;  %s97_s11 = smov 1   ;;  %v22_v1 = vld [vmem:[#allocation2 + $0x8] sm:$0xff]  ;;  %v27_v2 = vlaneseq  ;;  %s98_s12 = smov [#allocation5]  }
   0xe   :  { %23 = vrot.lane.b32.xlu0 %v21_v0, %s97_s11  ;;  %s40_s13 = sshll.u32 %s98_s12, 4  ;;  %s41_s13 = int_to_ptr.vmem [resolvable:$true] %s40_s13 }
   0xf   :  { %v28_v3 = vand.u32 127, %v27_v2  ;;  %s72_s0 = scalar_lea.vmem %s41_s13, 256  ;;  %p77_p6 = scmp.lt.s32.totalorder %s41_s13, %s41_s13 }
  0x10   :  { %p73_p5 = scmp.ne.s32.totalorder %s41_s13, %s72_s0  ;;  %p78_p7 = scmp.lt.s32.totalorder %s72_s0, %s72_s0 }
  0x11   :  { %vm29_vm0 = vcmp.lt.s32.totalorder %v28_v3, 1 }
  0x12   :  { %25 = vrot.lane.b32.xlu0 %v22_v1, %s97_s11  ;;  %p79_p8 = por %p78_p7, %p77_p6 }
  0x14   :  { %p80_p9 = pnand %p79_p8, %p73_p5 }
  0x80   :  { %v24_v4 = vpop.permute.xlu0 %23 }
  0x84   :  { %v26_v5 = vpop.permute.xlu0 %25 }
  0x85   :  { %v30_v6 = vsel %vm29_vm0, %v24_v4, %v26_v5  ;;  %v31_v7 = vsel %vm29_vm0, %v26_v5, %v24_v4 }
  0x86   :  { %32 = vst [vmem:[#allocation5] sm:$0xff] %v31_v7  ;;  %33 = vst [vmem:[#allocation5 + $0x8] sm:$0xff] %v30_v6 }
  0x87   :  { %83 = shalt.err (!%p80_p9)
}
  0x88   :  { %43 = dma.vmem_to_hbm [thread:$0]  %s41_s13, 256, %s116_s1, [#allocation4]  }
  0x89   :  { %94 = dma.done.wait [#allocation4], 256  }
  0x8a   :  { %95 = vsyncadd [#allocation4], 4294967040 }
  0x8b   :  { %47 = vsyncpa [#allocation3], 1 }
  0x8c   :  { %48 = vsyncpa [#allocation4], 1 }

// kernel: tpu_custom_call.1
= control target key start
LH: loop header
LB: loop body
LE: loop exit
PB: predicated region body
PF: predicated region fallthrough
CT: control target
= control target key end

     0   :  { %9 = vsyncpa [#allocation3], 0  ;;  %s553_s0 = inlined_call_operand.hbm [shape: f32[8,256], index: 0, kind: input, shape index: {}]   ;;  %s554_s1 = inlined_call_operand.vmem [shape: f32[8,9], index: 1, kind: input, shape index: {}]   ;;  %s555_s2 = inlined_call_operand.vmem [shape: f32[8,1], index: 2, kind: input, shape index: {}]   ;;  %s556_s3 = inlined_call_operand.hbm [shape: f32[9,256], index: 3, kind: input, shape index: {}]   ;;  %s557_s4 = inlined_call_operand.hbm [shape: f32[8,256], index: 4, kind: output, shape index: {}]  }
   0x1   :  { %10 = vsyncpa [#allocation6], 0 }
   0x2   :  { %11 = vsyncpa [#allocation4], 0  ;;  %s442_s15 = smov [#allocation2]   ;;  %s443_s17 = smov [#allocation5]  }
   0x3   :  { %s18_s16 = sshll.u32 %s442_s15, 4  ;;  %s31_s18 = sshll.u32 %s443_s17, 4  ;;  %s19_s16 = int_to_ptr.vmem [resolvable:$true] %s18_s16  ;;  %s32_s18 = int_to_ptr.vmem [resolvable:$true] %s31_s18 }
   0x4   :  { %s384_s19 = scalar_lea.vmem %s19_s16, 256  ;;  %p389_p1 = scmp.lt.s32.totalorder %s19_s16, %s19_s16 }
   0x5   :  { %p385_p0 = scmp.ne.s32.totalorder %s19_s16, %s384_s19  ;;  %p390_p2 = scmp.lt.s32.totalorder %s384_s19, %s384_s19 }
   0x7   :  { %p391_p3 = por %p390_p2, %p389_p1 }
   0x9   :  { %p392_p4 = pnand %p391_p3, %p385_p0 }
   0xb   :  { %395 = shalt.err (!%p392_p4)
}
   0xc   :  { %21 = dma.hbm_to_vmem [thread:$0]  %s553_s0, 256, %s19_s16, [#allocation3]  }
   0xd   :  { %s404_s22 = scalar_lea.vmem %s32_s18, 512  ;;  %p409_p6 = scmp.lt.s32.totalorder %s32_s18, %s32_s18 }
   0xe   :  { %p405_p5 = scmp.ne.s32.totalorder %s32_s18, %s404_s22  ;;  %p410_p7 = scmp.lt.s32.totalorder %s404_s22, %s404_s22 }
  0x10   :  { %p411_p8 = por %p410_p7, %p409_p6 }
  0x12   :  { %p412_p9 = pnand %p411_p8, %p405_p5 }
  0x14   :  { %415 = shalt.err (!%p412_p9)
}
  0x15   :  { %s444_s23 = smov 256   ;;  %s445_s24 = smov 16  }
  0x16   :  { %37 = dma.hbm_to_vmem [thread:$0]  %s556_s3, 512, %s32_s18, [#allocation6], %s444_s23, %s444_s23, %s445_s24  }
  0x17   :  { %436 = dma.done.wait [#allocation3], 256  }
  0x18   :  { %437 = vsyncadd [#allocation3], 4294967040 }
  0x19   :  { %438 = dma.done.wait [#allocation6], 512  }
  0x1a   :  { %439 = vsyncadd [#allocation6], 4294966784  ;;  %v446_v0 = vmov 0   ;;  %v447_v1 = vmov 4   ;;  %v47_v2 = vld [vmem:[%s554_s1] sm:$0xff]  ;;  %v497_v3 = vld [vmem:[#allocation2 + $0x8] sm:$0xff]  ;;  %v76_v21 = vlaneseq }
  0x1b   :  { %368 = vset.pattern.permute.xlu1 %v446_v0  ;;  %366 = vset.pattern.permute.xlu0 %v447_v1  ;;  %v46_v4 = vld [vmem:[%s555_s2] sm:$0xff]  ;;  %s448_s3 = smov 17   ;;  %v449_v6 = vmov 1   ;;  %v450_v7 = vmov 2   ;;  %v451_v8 = vmov 3   ;;  %s452_s1 = smov 15  }
  0x1c   :  { %89 = vperm.xlu1 %368, %v47_v2   ;;  %50 = vperm.xlu0 %366, %v47_v2   ;;  %v503_v5 = vld [vmem:[#allocation2] sm:$0xff]  ;;  %v453_v9 = vmov 5   ;;  %s454_s2 = smov 1   ;;  %v455_v10 = vmov 6   ;;  %v456_v11 = vmov 7   ;;  %s457_s30 = smov 127  }
  0x1d   :  { %v458_v12 = vmov 8   ;;  %s459_s5 = smov 113   ;;  %s460_s6 = smov 112   ;;  %v77_v24 = vshrl.u32 %v76_v21, 7  ;;  %vm69_vm0 = vcmask 138240   ;;  %vm101_vm1 = vcmask 130048  }
  0x1e   :  { %s461_s7 = smov 111   ;;  %v74_v29 = vld [vmem:[#allocation5] ss:$8 sm:$0x3]  ;;  %vm134_vm2 = vcmask 121856   ;;  %vm167_vm3 = vcmask 7168  }
  0x1f   :  { %v520_v27 = vsub.s32 0, %v77_v24  ;;  %v522_v28 = vsub.s32 1, %v77_v24  ;;  %v107_v31 = vld [vmem:[#allocation5 + $0x1] ss:$8 sm:$0x3]  ;;  %vm199_vm4 = vcmask 1039360  }
  0x20   :  { %367 = vset.pattern.permute.xlu0 %v446_v0  ;;  %63 = vrot.lane.b32.xlu1 %v497_v3, %s448_s3  ;;  %v140_v38 = vld [vmem:[#allocation5 + $0x2] ss:$8 sm:$0x3]  ;;  %v173_v39 = vld [vmem:[#allocation5 + $0x3] ss:$8 sm:$0x3] }
  0x21   :  { %57 = vperm.xlu0 %367, %v46_v4   ;;  %v79_v33 = vrot.slane %v74_v29, %v520_v27  ;;  %v83_v34 = vrot.slane %v74_v29, %v522_v28  ;;  %v112_v37 = vrot.slane %v107_v31, %v520_v27  ;;  %v116_v43 = vrot.slane %v107_v31, %v522_v28  ;;  %v206_v49 = vld [vmem:[#allocation5 + $0x5] ss:$8 sm:$0x3]  ;;  %v239_v62 = vld [vmem:[#allocation5 + $0x6] ss:$8 sm:$0x3] }
  0x22   :  { %v145_v50 = vrot.slane %v140_v38, %v520_v27  ;;  %v149_v51 = vrot.slane %v140_v38, %v522_v28  ;;  %v178_v52 = vrot.slane %v173_v39, %v520_v27  ;;  %v182_v55 = vrot.slane %v173_v39, %v522_v28  ;;  %s462_s8 = smov [#allocation7]  }
  0x23   :  { %v211_v60 = vrot.slane %v206_v49, %v520_v27  ;;  %v215_v61 = vrot.slane %v206_v49, %v522_v28  ;;  %vm232_vm5 = vcmask 924672   ;;  %vm265_vm6 = vcmask 916480   ;;  %s335_s9 = sshll.u32 %s462_s8, 4  ;;  %s336_s9 = int_to_ptr.vmem [resolvable:$true] %s335_s9 }
  0x24   :  { %67 = vrot.lane.b32.xlu1 %v503_v5, %s448_s3  ;;  %vm298_vm7 = vcmask 908288   ;;  %s416_s10 = scalar_lea.vmem %s336_s9, 256  ;;  %p421_p11 = scmp.lt.s32.totalorder %s336_s9, %s336_s9 }
  0x25   :  { %369 = vset.pattern.permute.xlu0 %v449_v6  ;;  %p417_p10 = scmp.ne.s32.totalorder %s336_s9, %s416_s10  ;;  %p422_p12 = scmp.lt.s32.totalorder %s416_s10, %s416_s10 }
  0x26   :  { %122 = vperm.xlu0 %369, %v47_v2  }
  0x27   :  { %p423_p13 = por %p422_p12, %p421_p11 }
  0x28   :  { %96 = vrot.lane.b32.xlu1 %v497_v3, %s445_s24 }
  0x29   :  { %p424_p0 = pnand %p423_p13, %p417_p10 }
  0x2a   :  { %370 = vset.pattern.permute.xlu0 %v450_v7  ;;  %v244_v7 = vrot.slane %v239_v62, %v520_v27 }
  0x2b   :  { %155 = vperm.xlu0 %370, %v47_v2  }
  0x2c   :  { %99 = vrot.lane.b32.xlu1 %v503_v5, %s445_s24 }
  0x2f   :  { %371 = vset.pattern.permute.xlu0 %v451_v8  ;;  %v248_v8 = vrot.slane %v239_v62, %v522_v28 }
  0x30   :  { %129 = vrot.lane.b32.xlu1 %v497_v3, %s452_s1  ;;  %188 = vperm.xlu0 %371, %v47_v2  }
  0x34   :  { %132 = vrot.lane.b32.xlu1 %v503_v5, %s452_s1  ;;  %372 = vset.pattern.permute.xlu0 %v453_v9 }
  0x35   :  { %221 = vperm.xlu0 %372, %v47_v2  }
  0x38   :  { %162 = vrot.lane.b32.xlu1 %v497_v3, %s454_s2 }
  0x39   :  { %373 = vset.pattern.permute.xlu0 %v455_v10 }
  0x3a   :  { %254 = vperm.xlu0 %373, %v47_v2  }
  0x3c   :  { %165 = vrot.lane.b32.xlu1 %v503_v5, %s454_s2 }
  0x3e   :  { %374 = vset.pattern.permute.xlu0 %v456_v11 }
  0x3f   :  { %287 = vperm.xlu0 %374, %v47_v2  }
  0x40   :  { %195 = vrot.lane.b32.xlu1 %v503_v5, %s457_s30 }
  0x43   :  { %375 = vset.pattern.permute.xlu0 %v458_v12 }
  0x44   :  { %197 = vrot.lane.b32.xlu1 %v497_v3, %s457_s30  ;;  %320 = vperm.xlu0 %375, %v47_v2  }
  0x48   :  { %228 = vrot.lane.b32.xlu1 %v503_v5, %s459_s5 }
  0x4c   :  { %230 = vrot.lane.b32.xlu1 %v497_v3, %s459_s5 }
  0x50   :  { %261 = vrot.lane.b32.xlu1 %v503_v5, %s460_s6 }
  0x54   :  { %263 = vrot.lane.b32.xlu1 %v497_v3, %s460_s6 }
  0x58   :  { %294 = vrot.lane.b32.xlu1 %v503_v5, %s461_s7 }
  0x5c   :  { %296 = vrot.lane.b32.xlu1 %v497_v3, %s461_s7 }
  0x97   :  { %v90_v13 = vpop.permute.xlu1 %89  ;;  %v51_v22 = vpop.permute.xlu0 %50 }
  0x98   :  { %v53_v41 = vmul.f32 %v51_v22, %v503_v5  ;;  %v54_v42 = vmul.f32 %v51_v22, %v497_v3 }
  0x9b   :  { %v64_v14 = vpop.permute.xlu1 %63 }
  0x9c   :  { %v58_v26 = vpop.permute.xlu0 %57 }
  0x9d   :  { %v60_v1 = vadd.f32 %v58_v26, %v53_v41  ;;  %v61_v2 = vadd.f32 %v58_v26, %v54_v42  ;;  %v305_v41 = vld [vmem:[#allocation5 + $0x10] ss:$8 sm:$0x3] }
  0x9e   :  { %v310_v49 = vrot.slane %v305_v41, %v520_v27 }
  0x9f   :  { %v68_v15 = vpop.permute.xlu1 %67 }
  0xa0   :  { %v70_v35 = vsel %vm69_vm0, %v68_v15, %v64_v14  ;;  %v73_v36 = vsel %vm69_vm0, %v64_v14, %v68_v15  ;;  %v272_v15 = vld [vmem:[#allocation5 + $0x7] ss:$8 sm:$0x3] }
  0xa1   :  { %v123_v32 = vpop.permute.xlu0 %122  ;;  %v86_v45 = vmul.f32 %v79_v33, %v73_v36  ;;  %v87_v46 = vmul.f32 %v83_v34, %v70_v35  ;;  %v277_v29 = vrot.slane %v272_v15, %v520_v27  ;;  %v281_v31 = vrot.slane %v272_v15, %v522_v28 }
  0xa3   :  { %v97_v16 = vpop.permute.xlu1 %96  ;;  %v92_v63 = vmul.f32 %v90_v13, %v86_v45  ;;  %v93_v0 = vmul.f32 %v90_v13, %v87_v46 }
  0xa6   :  { %v156_v44 = vpop.permute.xlu0 %155 }
  0xa7   :  { %v100_v17 = vpop.permute.xlu1 %99 }
  0xa8   :  { %v102_v47 = vsel %vm101_vm1, %v100_v17, %v97_v16  ;;  %v105_v48 = vsel %vm101_vm1, %v97_v16, %v100_v17  ;;  %v94_v16 = vadd.f32 %v92_v63, %v60_v1  ;;  %v95_v17 = vadd.f32 %v93_v0, %v61_v2 }
  0xa9   :  { %v119_v57 = vmul.f32 %v112_v37, %v105_v48  ;;  %v120_v58 = vmul.f32 %v116_v43, %v102_v47 }
  0xab   :  { %v130_v18 = vpop.permute.xlu1 %129  ;;  %v189_v59 = vpop.permute.xlu0 %188  ;;  %v125_v10 = vmul.f32 %v123_v32, %v119_v57  ;;  %v126_v11 = vmul.f32 %v123_v32, %v120_v58 }
  0xaf   :  { %v133_v19 = vpop.permute.xlu1 %132 }
  0xb0   :  { %v135_v53 = vsel %vm134_vm2, %v133_v19, %v130_v18  ;;  %v138_v54 = vsel %vm134_vm2, %v130_v18, %v133_v19  ;;  %v222_v14 = vpop.permute.xlu0 %221 }
  0xb1   :  { %v152_v3 = vmul.f32 %v145_v50, %v138_v54  ;;  %v153_v4 = vmul.f32 %v149_v51, %v135_v53  ;;  %v314_v50 = vrot.slane %v305_v41, %v522_v28 }
  0xb3   :  { %v163_v20 = vpop.permute.xlu1 %162  ;;  %v159_v21 = vmul.f32 %v156_v44, %v153_v4 }
  0xb5   :  { %v255_v33 = vpop.permute.xlu0 %254 }
  0xb7   :  { %v166_v23 = vpop.permute.xlu1 %165 }
  0xb8   :  { %v168_v5 = vsel %vm167_vm3, %v166_v23, %v163_v20  ;;  %v171_v6 = vsel %vm167_vm3, %v163_v20, %v166_v23  ;;  %v158_v20 = vmul.f32 %v156_v44, %v152_v3 }
  0xb9   :  { %v185_v18 = vmul.f32 %v178_v52, %v171_v6  ;;  %v186_v19 = vmul.f32 %v182_v55, %v168_v5 }
  0xba   :  { %v288_v48 = vpop.permute.xlu0 %287 }
  0xbb   :  { %v196_v25 = vpop.permute.xlu1 %195  ;;  %v191_v36 = vmul.f32 %v189_v59, %v185_v18  ;;  %v192_v37 = vmul.f32 %v189_v59, %v186_v19 }
  0xbf   :  { %v198_v30 = vpop.permute.xlu1 %197  ;;  %v321_v62 = vpop.permute.xlu0 %320 }
  0xc0   :  { %v200_v12 = vsel %vm199_vm4, %v196_v25, %v198_v30  ;;  %v204_v13 = vsel %vm199_vm4, %v198_v30, %v196_v25  ;;  %v127_v25 = vadd.f32 %v125_v10, %v94_v16  ;;  %v128_v30 = vadd.f32 %v126_v11, %v95_v17 }
  0xc1   :  { %v218_v24 = vmul.f32 %v211_v60, %v200_v12  ;;  %v219_v26 = vmul.f32 %v215_v61, %v204_v13 }
  0xc2   :  { %v161_v42 = vadd.f32 %v159_v21, %v128_v30 }
  0xc3   :  { %v229_v40 = vpop.permute.xlu1 %228  ;;  %v224_v43 = vmul.f32 %v222_v14, %v218_v24  ;;  %v225_v44 = vmul.f32 %v222_v14, %v219_v26 }
  0xc4   :  { %v194_v52 = vadd.f32 %v192_v37, %v161_v42 }
  0xc7   :  { %v231_v56 = vpop.permute.xlu1 %230 }
  0xc8   :  { %v233_v22 = vsel %vm232_vm5, %v229_v40, %v231_v56  ;;  %v237_v23 = vsel %vm232_vm5, %v231_v56, %v229_v40  ;;  %v160_v40 = vadd.f32 %v158_v20, %v127_v25  ;;  %v227_v56 = vadd.f32 %v225_v44, %v194_v52 }
  0xc9   :  { %v251_v38 = vmul.f32 %v244_v7, %v233_v22  ;;  %v252_v39 = vmul.f32 %v248_v8, %v237_v23 }
  0xca   :  { %v193_v51 = vadd.f32 %v191_v36, %v160_v40 }
  0xcb   :  { %v262_v9 = vpop.permute.xlu1 %261  ;;  %v257_v53 = vmul.f32 %v255_v33, %v251_v38  ;;  %v258_v54 = vmul.f32 %v255_v33, %v252_v39 }
  0xcc   :  { %v226_v55 = vadd.f32 %v224_v43, %v193_v51 }
  0xcd   :  { %v260_v0 = vadd.f32 %v258_v54, %v227_v56 }
  0xce   :  { %v259_v63 = vadd.f32 %v257_v53, %v226_v55 }
  0xcf   :  { %v264_v32 = vpop.permute.xlu1 %263 }
  0xd0   :  { %v266_v34 = vsel %vm265_vm6, %v262_v9, %v264_v32  ;;  %v270_v35 = vsel %vm265_vm6, %v264_v32, %v262_v9 }
  0xd1   :  { %v284_v45 = vmul.f32 %v277_v29, %v266_v34  ;;  %v285_v46 = vmul.f32 %v281_v31, %v270_v35 }
  0xd3   :  { %v295_v47 = vpop.permute.xlu1 %294  ;;  %v290_v57 = vmul.f32 %v288_v48, %v284_v45  ;;  %v291_v58 = vmul.f32 %v288_v48, %v285_v46 }
  0xd5   :  { %v292_v27 = vadd.f32 %v290_v57, %v259_v63  ;;  %v293_v28 = vadd.f32 %v291_v58, %v260_v0 }
  0xd7   :  { %v297_v59 = vpop.permute.xlu1 %296 }
  0xd8   :  { %v299_v60 = vsel %vm298_vm7, %v295_v47, %v297_v59  ;;  %v303_v61 = vsel %vm298_vm7, %v297_v59, %v295_v47 }
  0xd9   :  { %v317_v1 = vmul.f32 %v310_v49, %v299_v60  ;;  %v318_v2 = vmul.f32 %v314_v50, %v303_v61 }
  0xdb   :  { %v323_v3 = vmul.f32 %v321_v62, %v317_v1  ;;  %v324_v4 = vmul.f32 %v321_v62, %v318_v2 }
  0xdd   :  { %v325_v5 = vadd.f32 %v323_v3, %v292_v27  ;;  %v326_v6 = vadd.f32 %v324_v4, %v293_v28 }
  0xdf   :  { %327 = vst [vmem:[#allocation7] sm:$0xff] %v325_v5  ;;  %328 = vst [vmem:[#allocation7 + $0x8] sm:$0xff] %v326_v6 }
  0xe0   :  { %427 = shalt.err (!%p424_p0)
}
  0xe1   :  { %338 = dma.vmem_to_hbm [thread:$0]  %s336_s9, 256, %s557_s4, [#allocation4]  }
  0xe2   :  { %440 = dma.done.wait [#allocation4], 256  }
  0xe3   :  { %441 = vsyncadd [#allocation4], 4294967040 }
  0xe4   :  { %342 = vsyncpa [#allocation3], 1 }
  0xe5   :  { %343 = vsyncpa [#allocation6], 1 }
  0xe6   :  { %344 = vsyncpa [#allocation4], 1 }

</bundles_post_ra>
